<compile_context>
chip_gen: v5e
topology: v5e:2x2
jax: 0.10.0
libtpu: 0.0.40
codegen_flags: <defaults>
</compile_context>

<pallas_src>
import functools

import jax
import jax.numpy as jnp
from jax.experimental import pallas as pl
from jax.experimental.pallas import tpu as pltpu

_TARGET_BLOCK_BYTES = 2 * 1024 * 1024  # per-block budget; 4x (in/out, double-buffered)
                                       # stays well under the 16 MiB scoped-VMEM default.


def _copy_kernel(x_ref, o_ref):
    # Chomp handled entirely by the BlockSpecs: lane-dense, unmasked copy.
    o_ref[...] = x_ref[...]


def _slice_kernel(x_ref, o_ref):
    # Small-L fallback: input block carries the full row; statically drop the tail.
    o_ref[...] = x_ref[:, : o_ref.shape[-1]]


def _pick_row_tile(rows: int, row_bytes: int, sub: int) -> int:
    """Sublane-friendly row tile aiming at ~_TARGET_BLOCK_BYTES per block."""
    if rows * row_bytes <= _TARGET_BLOCK_BYTES:
        return rows  # full dim is always a legal block extent
    tr = (_TARGET_BLOCK_BYTES // max(row_bytes, 1)) // sub * sub
    return int(min(max(tr, sub), rows))


def _pick_col_tile(l_out: int, itemsize: int, sub: int) -> int:
    """Widest multiple of 128 such that `sub` rows still fit the block budget."""
    max_tc = (_TARGET_BLOCK_BYTES // (sub * itemsize)) // 128 * 128
    return int(min(l_out // 128 * 128, max(max_tc, 128)))


@functools.partial(jax.jit, static_argnums=(1, 2, 3))
def chomp1d(x: jax.Array, chomp_size: int,
            _row_tile_override=None, _col_tile_override=None) -> jax.Array:
    """Pallas implementation of Chomp1d.forward: x[:, :, :-chomp_size]."""
    assert chomp_size > 0, "chomp_size must be positive"
    N, C, L = x.shape
    L_out = L - chomp_size
    assert L_out > 0, "chomp_size must be smaller than the sequence length"

    rows = N * C
    xf = x.reshape(rows, L)  # free: contiguous NCL -> (N*C, L)

    itemsize = jnp.dtype(x.dtype).itemsize
    sub = max(8, 32 // itemsize)  # sublane granularity: f32 -> 8, bf16 -> 16, int8 -> 32

    if L_out >= 128:
        # Column-tiled lane-dense copy path (chomp expressed in the BlockSpecs).
        tc = (_pick_col_tile(L_out, itemsize, sub)
              if _col_tile_override is None else int(_col_tile_override))
        tr = (_pick_row_tile(rows, tc * itemsize, sub)
              if _row_tile_override is None else int(_row_tile_override))
        grid = (pl.cdiv(rows, tr), pl.cdiv(L_out, tc))
        kernel = _copy_kernel
        in_spec = pl.BlockSpec((tr, tc), lambda i, j: (i, j))
        out_spec = pl.BlockSpec((tr, tc), lambda i, j: (i, j))
        dims = ("parallel", "parallel")
    else:
        # Short sequences: block width must equal the full (<128) dim, so read
        # the whole row and statically slice off the chomped tail in-kernel.
        tr = (_pick_row_tile(rows, L * itemsize, sub)
              if _row_tile_override is None else int(_row_tile_override))
        grid = (pl.cdiv(rows, tr),)
        kernel = _slice_kernel
        in_spec = pl.BlockSpec((tr, L), lambda i: (i, 0))
        out_spec = pl.BlockSpec((tr, L_out), lambda i: (i, 0))
        dims = ("parallel",)

    out = pl.pallas_call(
        kernel,
        out_shape=jax.ShapeDtypeStruct((rows, L_out), x.dtype),
        grid=grid,
        in_specs=[in_spec],
        out_specs=out_spec,
        compiler_params=pltpu.CompilerParams(dimension_semantics=dims),
    )(xf)

    return out.reshape(N, C, L_out)


if __name__ == "__main__":
    key = jax.random.PRNGKey(0)
    k1, k2, k3 = jax.random.split(key, 3)

    # 1) Short-sequence path (L_out = 13 < 128): full-row block + static slice.
    N, C, L, chomp = 2, 4, 16, 3
    x = jax.random.normal(k1, (N, C, L), dtype=jnp.float32)
    out = jax.block_until_ready(chomp1d(x, chomp))
    assert out.shape == (N, C, L - chomp), out.shape
    assert out.dtype == x.dtype
    assert jnp.array_equal(out, x[:, :, :-chomp]), "mismatch (short-sequence path)"

    # 2) Column-tiled copy path with a ragged tail column block and bf16
    #    sublane packing: L_out = 195 -> tc = 128, grid = (1, 2).
    N2, C2, L2, chomp2 = 2, 16, 200, 5
    x2 = jax.random.normal(k2, (N2, C2, L2), dtype=jnp.float32).astype(jnp.bfloat16)
    out2 = jax.block_until_ready(chomp1d(x2, chomp2))
    assert out2.shape == (N2, C2, L2 - chomp2) and out2.dtype == x2.dtype
    assert jnp.array_equal(out2, x2[:, :, :-chomp2]), "mismatch (ragged-column path)"

    # 3) Forced small tiles -> ragged row AND column edge blocks on the copy
    #    path (rows = 60 with tr = 16, L_out = 293 with tc = 128).
    N3, C3, L3, chomp3 = 3, 20, 300, 7
    x3 = jax.random.normal(k3, (N3, C3, L3), dtype=jnp.float32)
    out3 = jax.block_until_ready(chomp1d(x3, chomp3, 16, 128))
    assert jnp.array_equal(out3, x3[:, :, :-chomp3]), "mismatch (forced-tile path)"

    print("KERNEL_OK")
</pallas_src>

<mosaic_0001>
module attributes {stable_mosaic.version = 11 : i64} {
  func.func @_slice_kernel(%arg0: i32, %arg1: memref<8x16xf32, #tpu.memory_space<vmem>>, %arg2: memref<8x13xf32, #tpu.memory_space<vmem>>) attributes {dimension_semantics = [#tpu.dimension_semantics<parallel>], iteration_bounds = array<i64: 1>, scalar_prefetch = 0 : i64, scratch_operands = 0 : i64, tpu.core_type = #tpu.core_type<tc>, window_params = [{transform_indices = @transform_0, window_bounds = array<i64: 8, 16>}, {transform_indices = @transform_1, window_bounds = array<i64: 8, 13>}]} {
    %c0 = arith.constant 0 : index
    %c0_0 = arith.constant 0 : index
    %0 = vector.load %arg1[%c0, %c0_0] : memref<8x16xf32, #tpu.memory_space<vmem>>, vector<8x13xf32>
    %c0_1 = arith.constant 0 : index
    %c0_2 = arith.constant 0 : index
    %1 = vector.load %arg2[%c0_1, %c0_2] : memref<8x13xf32, #tpu.memory_space<vmem>>, vector<8x13xf32>
    tpu.vector_store %arg2[%c0_1, %c0_2], %0 {strides = array<i32>} : memref<8x13xf32, #tpu.memory_space<vmem>>, vector<8x13xf32>,
    return
  }
  func.func @transform_0(%arg0: i32) -> (i32, i32) {
    %c0_i32 = arith.constant 0 : i32
    %c0_i32_0 = arith.constant 0 : i32
    return %arg0, %c0_i32 : i32, i32
  }
  func.func @transform_1(%arg0: i32) -> (i32, i32) {
    %c0_i32 = arith.constant 0 : i32
    %c0_i32_0 = arith.constant 0 : i32
    return %arg0, %c0_i32 : i32, i32
  }
}

</mosaic_0001>

<bundles_post_ra>
// kernel: chomp1d.1
= control target key start
LH: loop header
LB: loop body
LE: loop exit
PB: predicated region body
PF: predicated region fallthrough
CT: control target
= control target key end

     0   :  { %6 = vsyncpa [#allocation3], 0  ;;  %s115_s0 = inlined_call_operand.hbm [shape: f32[8,16], index: 0, kind: input, shape index: {}]   ;;  %s116_s1 = inlined_call_operand.hbm [shape: f32[8,13], index: 1, kind: output, shape index: {}]  }
   0x1   :  { %7 = vsyncpa [#allocation4], 0  ;;  %s13_s8 = sshll.u32 %s115_s0, 4  ;;  %s97_s9 = smov [#allocation2]   ;;  %s14_s8 = int_to_ptr.hbm [resolvable:$true] %s13_s8 }
   0x2   :  { %s15_s10 = sshll.u32 %s97_s9, 4  ;;  %s16_s10 = int_to_ptr.vmem [resolvable:$true] %s15_s10 }
   0x3   :  { %18 = dma.hbm_to_vmem [thread:$0]  %s14_s8, 128, %s16_s10, [#allocation3]  }
   0x4   :  { %93 = dma.done.wait [#allocation3], 128  }
   0x5   :  { %94 = vsyncadd [#allocation3], 4294967168  ;;  %s98_s11 = smov [#allocation5]   ;;  %s33_s15 = sshll.u32 %s116_s1, 4  ;;  %vm24_vm0 = vcmask 105472   ;;  %v23_v0 = vld [vmem:[#allocation2] sm:$0xff]  ;;  %s34_s15 = int_to_ptr.hbm [resolvable:$true] %s33_s15 }
   0x6   :  { %s31_s12 = sshll.u32 %s98_s11, 4  ;;  %25 = vst.msk [vmem:[#allocation5] sm:$0xff] %vm24_vm0, %v23_v0  ;;  %s32_s12 = int_to_ptr.vmem [resolvable:$true] %s31_s12 }
   0x7   :  { %36 = dma.vmem_to_hbm [thread:$0]  %s32_s12, 128, %s34_s15, [#allocation4]  }
   0x8   :  { %95 = dma.done.wait [#allocation4], 128  }
   0x9   :  { %96 = vsyncadd [#allocation4], 4294967168 }
   0xa   :  { %41 = vsyncpa [#allocation3], 1 }
   0xb   :  { %42 = vsyncpa [#allocation4], 1 }

</bundles_post_ra>
